<compile_context>
chip_gen: v7x
topology: tpu7x:2x2x1
jax: 0.10.0
libtpu: 0.0.40
codegen_flags: <defaults>
</compile_context>

<pallas_src>
import functools

import jax
import jax.numpy as jnp
from jax.experimental import pallas as pl
from jax.experimental.pallas import tpu as pltpu


def _round_up(x, m):
    return ((x + m - 1) // m) * m


# ----------------------------------------------------------------------------
# Kernels
# ----------------------------------------------------------------------------
def _layernorm_kernel(x_ref, gamma_ref, beta_ref, o_ref, *, eps, features):
    """Plain path: one logical row per sublane row, reduce over the lane axis."""
    x = x_ref[...].astype(jnp.float32)          # (R, F)

    mean = jnp.mean(x, axis=-1, keepdims=True)
    diff = x - mean

    # torch.Tensor.std default is the *unbiased* estimator (ddof=1).
    denom = jnp.float32(max(features - 1, 1))
    var = jnp.sum(diff * diff, axis=-1, keepdims=True) / denom
    std = jnp.sqrt(var)

    # (R,1) per-row reciprocal -> exact version is free under HBM traffic.
    inv = pl.reciprocal(std + jnp.float32(eps), approx=False)

    y = (diff * inv) * gamma_ref[...] + beta_ref[...]
    o_ref[...] = y.astype(o_ref.dtype)


def _layernorm_kernel_packed(x_ref, gamma_ref, beta_ref, seg_ref, o_ref, *,
                             eps, features):
    """Lane-dense path: k = 128 // features rows packed per 128-lane row.

    seg_ref is a (128,128) block-diagonal-ones matrix; x @ seg gives every
    lane the sum over its own `features`-wide segment (and broadcasts it back
    across the segment), so both reductions run on the MXU and the output
    stays lane-dense.
    """
    x = x_ref[...].astype(jnp.float32)          # (R, 128)
    seg = seg_ref[...]                          # (128, 128) f32, 0/1

    seg_sum = jnp.dot(x, seg, preferred_element_type=jnp.float32)
    mean = seg_sum * jnp.float32(1.0 / features)
    diff = x - mean

    seg_sq = jnp.dot(diff * diff, seg, preferred_element_type=jnp.float32)
    denom = jnp.float32(max(features - 1, 1))
    std = jnp.sqrt(seg_sq / denom)

    inv = pl.reciprocal(std + jnp.float32(eps), approx=False)

    y = (diff * inv) * gamma_ref[...] + beta_ref[...]
    o_ref[...] = y.astype(o_ref.dtype)


# ----------------------------------------------------------------------------
# Tile / VMEM planning
# ----------------------------------------------------------------------------
def _vmem_plan():
    """Returns (block working-set budget, vmem_limit_bytes) per generation."""
    vmem_cap = None
    try:
        info = pltpu.get_tpu_info()
        vmem_cap = getattr(info, "vmem_capacity_bytes", None)
    except Exception:
        vmem_cap = None
    if vmem_cap is not None and vmem_cap >= (100 << 20):
        # v5e / v6e: 128 MiB physical VMEM -> big blocks, few grid steps.
        return 80 << 20, 96 << 20
    # v7x (64 MiB per TensorCore) or unknown: stay conservative.
    return 36 << 20, 46 << 20


def _choose_row_tile(rows_view, lane_width, itemsize, budget_bytes):
    """Largest row tile whose *real* VMEM footprint fits the budget.

    Footprint per row = double-buffered in+out blocks in the input dtype plus
    ~4 block-sized f32 intermediates, with lanes padded to 128.
    """
    lanes = _round_up(lane_width, 128)
    per_row = lanes * (2 * 2 * itemsize + 4 * 4)
    tile = max(8, (budget_bytes // per_row) // 8 * 8)
    tile = min(tile, 32768)

    if rows_view <= 8:
        # Single block whose sublane dim equals the full array dim.
        return rows_view

    # Keep >= ~4 grid steps when there is enough work: shards rows across
    # both v7x TensorCores and keeps the DMA pipeline overlapped.
    if rows_view >= 4 * 8:
        tile = min(tile, _round_up((rows_view + 3) // 4, 8))

    # Never let the block exceed the array extent (ragged *last* block only).
    tile = min(tile, (rows_view // 8) * 8)
    return max(tile, 8)


# ----------------------------------------------------------------------------
# Wrapper
# ----------------------------------------------------------------------------
def layer_norm(x, a_2, b_2, eps=1e-6):
    """LayerNorm over the last axis of x, matching the PyTorch module.

    x:   (..., features)
    a_2: (features,)  scale
    b_2: (features,)  shift
    """
    orig_shape = x.shape
    features = orig_shape[-1]
    rows = 1
    for d in orig_shape[:-1]:
        rows *= d

    itemsize = jnp.dtype(x.dtype).itemsize
    budget_bytes, vmem_cap = _vmem_plan()

    # Pre-cast params to f32 once (constant index_map keeps them VMEM-resident).
    gamma = a_2.astype(jnp.float32).reshape(1, features)
    beta = b_2.astype(jnp.float32).reshape(1, features)

    pack = (features < 128
            and 128 % features == 0
            and rows % (128 // features) == 0)

    if pack:
        k = 128 // features
        rows_view = rows // k
        width = 128
        x2 = x.reshape(rows_view, width)               # free row-major reshape
        gamma_in = jnp.tile(gamma, (1, k))              # (1, 128)
        beta_in = jnp.tile(beta, (1, k))
        lane = jnp.arange(width, dtype=jnp.int32)
        seg_mat = (lane[:, None] // features == lane[None, :] // features)
        seg_mat = seg_mat.astype(jnp.float32)           # (128, 128) block-diag 1s
        kernel = functools.partial(_layernorm_kernel_packed, eps=eps,
                                   features=features)
        extra_inputs = (seg_mat,)
        extra_specs = [pl.BlockSpec((width, width), lambda i: (0, 0))]
    else:
        rows_view = rows
        width = features
        x2 = x.reshape(rows_view, width)
        gamma_in, beta_in = gamma, beta
        kernel = functools.partial(_layernorm_kernel, eps=eps,
                                   features=features)
        extra_inputs = ()
        extra_specs = []

    row_tile = _choose_row_tile(rows_view, width, itemsize, budget_bytes)
    grid = (pl.cdiv(rows_view, row_tile),)

    # VMEM limit: double-buffered in/out + f32 intermediates + params/seg + pad.
    lanes_padded = _round_up(width, 128)
    block_io = row_tile * lanes_padded * itemsize
    block_f32 = row_tile * lanes_padded * 4
    param_bytes = 2 * lanes_padded * 4 + (128 * 128 * 4 if pack else 0)
    est = 2 * 2 * block_io + 4 * block_f32 + param_bytes
    vmem_limit = min(max(int(est * 1.25) + (2 << 20), 32 << 20), vmem_cap)

    out = pl.pallas_call(
        kernel,
        out_shape=jax.ShapeDtypeStruct((rows_view, width), x.dtype),
        grid_spec=pltpu.PrefetchScalarGridSpec(
            num_scalar_prefetch=0,
            grid=grid,
            in_specs=[
                pl.BlockSpec((row_tile, width), lambda i: (i, 0)),
                pl.BlockSpec((1, width), lambda i: (0, 0)),
                pl.BlockSpec((1, width), lambda i: (0, 0)),
            ] + extra_specs,
            out_specs=pl.BlockSpec((row_tile, width), lambda i: (i, 0)),
        ),
        compiler_params=pltpu.CompilerParams(
            dimension_semantics=("parallel",),   # rows independent (megacore)
            vmem_limit_bytes=vmem_limit,
        ),
    )(x2, gamma_in, beta_in, *extra_inputs)

    return out.reshape(orig_shape)


# ----------------------------------------------------------------------------
# Demo / self-test
# ----------------------------------------------------------------------------
def _reference(x, a_2, b_2, eps):
    features = x.shape[-1]
    mean = jnp.mean(x, axis=-1, keepdims=True)
    std = jnp.sqrt(
        jnp.sum((x - mean) ** 2, axis=-1, keepdims=True)
        / max(features - 1, 1))
    return a_2 * (x - mean) / (std + eps) + b_2


if __name__ == "__main__":
    key = jax.random.PRNGKey(0)
    k1, k2, k3, k4 = jax.random.split(key, 4)

    # --- primary case (matches the module's intended use): hidden=32 --------
    batch, seq, hidden = 2, 8, 32
    x = jax.random.normal(k1, (batch, seq, hidden), dtype=jnp.float32)
    a_2 = jnp.ones((hidden,), dtype=jnp.float32)     # nn.Parameter(torch.ones)
    b_2 = jnp.zeros((hidden,), dtype=jnp.float32)    # nn.Parameter(torch.zeros)

    y = layer_norm(x, a_2, b_2, eps=1e-6)
    y = jax.block_until_ready(y)
    y_ref = _reference(x, a_2, b_2, 1e-6)
    # Exact reciprocal now; tolerance leaves margin only for MXU f32 pass
    # decomposition in the lane-packed segment reductions.
    assert jnp.allclose(y, y_ref, atol=2e-3, rtol=2e-3), "mismatch (packed path)"

    # --- secondary case exercising the plain (lane-wide) path ---------------
    hidden2 = 128
    x2 = jax.random.normal(k2, (batch, seq, hidden2), dtype=jnp.float32)
    a2_2 = jax.random.normal(k3, (hidden2,), dtype=jnp.float32)
    b2_2 = jax.random.normal(k4, (hidden2,), dtype=jnp.float32)

    y2 = layer_norm(x2, a2_2, b2_2, eps=1e-6)
    y2 = jax.block_until_ready(y2)
    y2_ref = _reference(x2, a2_2, b2_2, 1e-6)
    assert jnp.allclose(y2, y2_ref, atol=2e-3, rtol=2e-3), "mismatch (plain path)"

    print("KERNEL_OK")
</pallas_src>

<mosaic_0001>
module attributes {stable_mosaic.version = 11 : i64} {
  func.func @_layernorm_kernel_packed(%arg0: i32, %arg1: memref<4x128xf32, #tpu.memory_space<vmem>>, %arg2: memref<1x128xf32, #tpu.memory_space<vmem>>, %arg3: memref<1x128xf32, #tpu.memory_space<vmem>>, %arg4: memref<128x128xf32, #tpu.memory_space<vmem>>, %arg5: memref<4x128xf32, #tpu.memory_space<vmem>>) attributes {dimension_semantics = [#tpu.dimension_semantics<parallel>], iteration_bounds = array<i64: 1>, scalar_prefetch = 0 : i64, scratch_operands = 0 : i64, tpu.core_type = #tpu.core_type<tc>, window_params = [{transform_indices = @transform_0, window_bounds = array<i64: 4, 128>}, {pipeline_mode = #tpu.pipeline_mode<synchronous>, transform_indices = @transform_1, window_bounds = array<i64: 1, 128>}, {pipeline_mode = #tpu.pipeline_mode<synchronous>, transform_indices = @transform_2, window_bounds = array<i64: 1, 128>}, {pipeline_mode = #tpu.pipeline_mode<synchronous>, transform_indices = @transform_3, window_bounds = array<i64: 128, 128>}, {transform_indices = @transform_4, window_bounds = array<i64: 4, 128>}]} {
    %c0 = arith.constant 0 : index
    %c0_0 = arith.constant 0 : index
    %0 = vector.load %arg1[%c0, %c0_0] : memref<4x128xf32, #tpu.memory_space<vmem>>, vector<4x128xf32>
    %c0_1 = arith.constant 0 : index
    %c0_2 = arith.constant 0 : index
    %1 = vector.load %arg4[%c0_1, %c0_2] : memref<128x128xf32, #tpu.memory_space<vmem>>, vector<128x128xf32>
    %cst = arith.constant dense<0.000000e+00> : vector<4x128xf32>
    %2 = tpu.matmul %0, %1, %cst {dimension_numbers = #tpu.dot_dimension_numbers<[1], [0], [0], [1], [0, 0, 1, 1], [], []>} : vector<4x128xf32>, vector<128x128xf32>, vector<4x128xf32> -> vector<4x128xf32>
    %cst_3 = arith.constant 3.125000e-02 : f32
    %3 = vector.broadcast %cst_3 : f32 to vector<4x128xf32>
    %4 = arith.mulf %2, %3 : vector<4x128xf32>
    %5 = arith.subf %0, %4 : vector<4x128xf32>
    %6 = arith.mulf %5, %5 : vector<4x128xf32>
    %cst_4 = arith.constant dense<0.000000e+00> : vector<4x128xf32>
    %7 = tpu.matmul %6, %1, %cst_4 {dimension_numbers = #tpu.dot_dimension_numbers<[1], [0], [0], [1], [0, 0, 1, 1], [], []>} : vector<4x128xf32>, vector<128x128xf32>, vector<4x128xf32> -> vector<4x128xf32>
    %cst_5 = arith.constant 3.100000e+01 : f32
    %8 = vector.broadcast %cst_5 : f32 to vector<4x128xf32>
    %9 = arith.divf %7, %8 : vector<4x128xf32>
    %10 = math.sqrt %9 : vector<4x128xf32>
    %cst_6 = arith.constant 9.99999997E-7 : f32
    %11 = vector.broadcast %cst_6 : f32 to vector<4x128xf32>
    %12 = arith.addf %10, %11 : vector<4x128xf32>
    %13 = tpu.reciprocal %12 : vector<4x128xf32> -> vector<4x128xf32>
    %14 = arith.mulf %5, %13 : vector<4x128xf32>
    %c0_7 = arith.constant 0 : index
    %c0_8 = arith.constant 0 : index
    %15 = vector.load %arg2[%c0_7, %c0_8] : memref<1x128xf32, #tpu.memory_space<vmem>>, vector<1x128xf32>
    %16 = vector.broadcast %15 : vector<1x128xf32> to vector<4x128xf32>
    %17 = arith.mulf %14, %16 : vector<4x128xf32>
    %c0_9 = arith.constant 0 : index
    %c0_10 = arith.constant 0 : index
    %18 = vector.load %arg3[%c0_9, %c0_10] : memref<1x128xf32, #tpu.memory_space<vmem>>, vector<1x128xf32>
    %19 = vector.broadcast %18 : vector<1x128xf32> to vector<4x128xf32>
    %20 = arith.addf %17, %19 : vector<4x128xf32>
    %c0_11 = arith.constant 0 : index
    %c0_12 = arith.constant 0 : index
    %21 = vector.load %arg5[%c0_11, %c0_12] : memref<4x128xf32, #tpu.memory_space<vmem>>, vector<4x128xf32>
    tpu.vector_store %arg5[%c0_11, %c0_12], %20 {strides = array<i32>} : memref<4x128xf32, #tpu.memory_space<vmem>>, vector<4x128xf32>,
    return
  }
  func.func @transform_0(%arg0: i32) -> (i32, i32) {
    %c0_i32 = arith.constant 0 : i32
    %c0_i32_0 = arith.constant 0 : i32
    return %arg0, %c0_i32 : i32, i32
  }
  func.func @transform_1(%arg0: i32) -> (i32, i32) {
    %c0_i32 = arith.constant 0 : i32
    %c0_i32_0 = arith.constant 0 : i32
    %c0_i32_1 = arith.constant 0 : i32
    return %c0_i32, %c0_i32_0 : i32, i32
  }
  func.func @transform_2(%arg0: i32) -> (i32, i32) {
    %c0_i32 = arith.constant 0 : i32
    %c0_i32_0 = arith.constant 0 : i32
    %c0_i32_1 = arith.constant 0 : i32
    return %c0_i32, %c0_i32_0 : i32, i32
  }
  func.func @transform_3(%arg0: i32) -> (i32, i32) {
    %c0_i32 = arith.constant 0 : i32
    %c0_i32_0 = arith.constant 0 : i32
    %c0_i32_1 = arith.constant 0 : i32
    return %c0_i32, %c0_i32_0 : i32, i32
  }
  func.func @transform_4(%arg0: i32) -> (i32, i32) {
    %c0_i32 = arith.constant 0 : i32
    %c0_i32_0 = arith.constant 0 : i32
    return %arg0, %c0_i32 : i32, i32
  }
}

</mosaic_0001>

<bundles_post_ra>
// kernel: tpu_custom_call.1
= control target key start
LH: loop header
LB: loop body
LE: loop exit
PB: predicated region body
PF: predicated region fallthrough
CT: control target
= control target key end

     0   :  { %9 = vsyncpa [#allocation3], 0  ;;  %s569_s0 = inlined_call_operand.hbm [shape: f32[4,128], index: 0, kind: input, shape index: {}]   ;;  %s570_s1 = inlined_call_operand.vmem [shape: f32[1,128], index: 1, kind: input, shape index: {}]   ;;  %s571_s2 = inlined_call_operand.vmem [shape: f32[1,128], index: 2, kind: input, shape index: {}]   ;;  %s572_s3 = inlined_call_operand.hbm [shape: f32[128,128], index: 3, kind: input, shape index: {}]   ;;  %s573_s4 = inlined_call_operand.hbm [shape: f32[4,128], index: 4, kind: output, shape index: {}]  }
   0x1   :  { %10 = vsyncpa [#allocation6], 0 }
   0x2   :  { %11 = vsyncpa [#allocation4], 0  ;;  %s487_s15 = smov [#allocation2]   ;;  %s488_s17 = smov [#allocation5]  }
   0x3   :  { %s18_s16 = sshll.u32 %s487_s15, 4  ;;  %s31_s18 = sshll.u32 %s488_s17, 4  ;;  %s19_s16 = int_to_ptr.vmem [resolvable:$true] %s18_s16  ;;  %s520_s18 = int_to_ptr.vmem [resolvable:$true] %s31_s18 }
   0x4   :  { %s415_s21 = scalar_lea.hbm %s569_s0, 64 }
   0x5   :  { %p416_p0 = scmp.ne.s32.totalorder %s569_s0, %s415_s21  ;;  %p419_p1 = scmp.lt.u32.totalorder %s415_s21, %s569_s0 }
   0x7   :  { %p421_p2 = pnand %p419_p1, %p416_p0 }
   0x9   :  { %424 = shalt.err (!%p421_p2)
}
   0xa   :  { %s425_s26 = scalar_lea.vmem %s19_s16, 64  ;;  %p430_p4 = scmp.lt.s32.totalorder %s19_s16, %s19_s16 }
   0xb   :  { %p426_p3 = scmp.ne.s32.totalorder %s19_s16, %s425_s26  ;;  %p431_p5 = scmp.lt.s32.totalorder %s425_s26, %s425_s26 }
   0xd   :  { %p432_p6 = por %p431_p5, %p430_p4 }
   0xf   :  { %p433_p7 = pnand %p432_p6, %p426_p3 }
  0x11   :  { %436 = shalt.err (!%p433_p7)
}
  0x12   :  { %21 = dma.hbm_to_vmem [thread:$0]  %s569_s0, 64, %s19_s16, [#allocation3]  }
  0x13   :  { %s437_s5 = scalar_lea.hbm %s572_s3, 2048 }
  0x14   :  { %p438_p8 = scmp.ne.s32.totalorder %s572_s3, %s437_s5  ;;  %p441_p9 = scmp.lt.u32.totalorder %s437_s5, %s572_s3 }
  0x16   :  { %p443_p10 = pnand %p441_p9, %p438_p8 }
  0x18   :  { %446 = shalt.err (!%p443_p10)
}
  0x19   :  { %s447_s10 = scalar_lea.vmem %s520_s18, 2048  ;;  %p452_p12 = scmp.lt.s32.totalorder %s520_s18, %s520_s18 }
  0x1a   :  { %p448_p11 = scmp.ne.s32.totalorder %s520_s18, %s447_s10  ;;  %p453_p13 = scmp.lt.s32.totalorder %s447_s10, %s447_s10 }
  0x1c   :  { %p454_p0 = por %p453_p13, %p452_p12 }
  0x1e   :  { %p455_p1 = pnand %p454_p0, %p448_p11 }
  0x20   :  { %458 = shalt.err (!%p455_p1)
}
  0x21   :  { %s489_s0 = smov 128   ;;  %s490_s11 = smov 8  }
  0x22   :  { %37 = dma.hbm_to_vmem [thread:$0]  %s572_s3, 2048, %s520_s18, [#allocation6], %s489_s0, %s489_s0, %s490_s11  }
  0x23   :  { %481 = dma.done.wait [#allocation3], 64  }
  0x24   :  { %482 = vsyncadd [#allocation3], 4294967232 }
  0x25   :  { %483 = dma.done.wait [#allocation6], 2048  }
  0x26   :  { %484 = vsyncadd [#allocation6], 4294965248  ;;  %v491_v0 = vmov 0.0|0.0   ;;  %vm492_vm0 = vmmov 0   ;;  %v493_v1 = vmov 0.0   ;;  %v45_v2 = vld [vmem:[#allocation5] sm:$0xff] }
  0x27   :  { %355 = vmatprep.subr.bf16.mxu0 %v491_v0  ;;  %317 = vmatprep.mubr.msk.f32.mxu0 %vm492_vm0, %v493_v1  ;;  %v46_v3 = vld [vmem:[#allocation5 + $0x8] sm:$0xff]  ;;  %v47_v4 = vld [vmem:[#allocation5 + $0x10] sm:$0xff]  ;;  %v48_v6 = vld [vmem:[#allocation5 + $0x18] sm:$0xff]  ;;  %s494_s17 = smov [#allocation7]  }
  0x28   :  { %379 = vmatprep.subr.bf16.mxu1 %v491_v0  ;;  %352 = vmatprep.mubr.msk.f32.mxu1 %vm492_vm0, %v493_v1  ;;  %v356_v5 = vpack.c.bf16 %v46_v3, %v45_v2  ;;  %v359_v7 = vpack.c.bf16 %v48_v6, %v47_v4  ;;  %v49_v8 = vld [vmem:[#allocation5 + $0x20] sm:$0xff]  ;;  %v50_v9 = vld [vmem:[#allocation5 + $0x28] sm:$0xff]  ;;  %v51_v11 = vld [vmem:[#allocation5 + $0x30] sm:$0xff]  ;;  %s239_s18 = sshll.u32 %s494_s17, 4  ;;  %s240_s18 = int_to_ptr.vmem [resolvable:$true] %s239_s18 }
  0x29   :  { %v362_v10 = vpack.c.bf16 %v50_v9, %v49_v8  ;;  %v52_v12 = vld [vmem:[#allocation5 + $0x38] sm:$0xff]  ;;  %v53_v14 = vld [vmem:[#allocation5 + $0x40] sm:$0xff]  ;;  %v54_v15 = vld [vmem:[#allocation5 + $0x48] sm:$0xff]  ;;  %s459_s19 = scalar_lea.vmem %s240_s18, 64  ;;  %p464_p3 = scmp.lt.s32.totalorder %s240_s18, %s240_s18 }
  0x2a   :  { %357 = vmatpush3.bf16.msra.mxu0 %v356_v5  ;;  %381 = vmatpush3.bf16.msra.mxu1 %v356_v5  ;;  %v365_v13 = vpack.c.bf16 %v52_v12, %v51_v11  ;;  %v368_v16 = vpack.c.bf16 %v54_v15, %v53_v14  ;;  %v55_v17 = vld [vmem:[#allocation5 + $0x50] sm:$0xff]  ;;  %v56_v18 = vld [vmem:[#allocation5 + $0x58] sm:$0xff]  ;;  %v57_v20 = vld [vmem:[#allocation5 + $0x60] sm:$0xff]  ;;  %p460_p2 = scmp.ne.s32.totalorder %s240_s18, %s459_s19  ;;  %p465_p4 = scmp.lt.s32.totalorder %s459_s19, %s459_s19 }
  0x2b   :  { %358 = vmatprep.subr.bf16.mxu0 %v491_v0  ;;  %382 = vmatprep.subr.bf16.mxu1 %v491_v0  ;;  %v371_v19 = vpack.c.bf16 %v56_v18, %v55_v17  ;;  %v58_v21 = vld [vmem:[#allocation5 + $0x68] sm:$0xff]  ;;  %v59_v23 = vld [vmem:[#allocation5 + $0x70] sm:$0xff]  ;;  %v60_v24 = vld [vmem:[#allocation5 + $0x78] sm:$0xff] }
  0x2c   :  { %v374_v22 = vpack.c.bf16 %v58_v21, %v57_v20  ;;  %v377_v25 = vpack.c.bf16 %v60_v24, %v59_v23  ;;  %v44_v26 = vld [vmem:[#allocation2] sm:$0xf]  ;;  %p466_p5 = por %p465_p4, %p464_p3 }
  0x2d   :  { %v249_v42 = vld [vmem:[%s570_s1] ss:$0 sm:$0xff] }
  0x2e   :  { %360 = vmatpush3.bf16.msra.mxu0 %v359_v7  ;;  %384 = vmatpush3.bf16.msra.mxu1 %v359_v7  ;;  %v250_v44 = vld [vmem:[%s571_s2] ss:$0 sm:$0xff]  ;;  %p467_p6 = pnand %p466_p5, %p460_p2 }
  0x2f   :  { %361 = vmatprep.subr.bf16.mxu0 %v491_v0  ;;  %385 = vmatprep.subr.bf16.mxu1 %v491_v0 }
  0x32   :  { %363 = vmatpush3.bf16.msra.mxu0 %v362_v10  ;;  %387 = vmatpush3.bf16.msra.mxu1 %v362_v10 }
  0x33   :  { %364 = vmatprep.subr.bf16.mxu0 %v491_v0  ;;  %388 = vmatprep.subr.bf16.mxu1 %v491_v0 }
  0x36   :  { %366 = vmatpush3.bf16.msra.mxu0 %v365_v13  ;;  %390 = vmatpush3.bf16.msra.mxu1 %v365_v13 }
  0x37   :  { %367 = vmatprep.subr.bf16.mxu0 %v491_v0  ;;  %391 = vmatprep.subr.bf16.mxu1 %v491_v0 }
  0x3a   :  { %369 = vmatpush3.bf16.msra.mxu0 %v368_v16  ;;  %393 = vmatpush3.bf16.msra.mxu1 %v368_v16 }
  0x3b   :  { %370 = vmatprep.subr.bf16.mxu0 %v491_v0  ;;  %394 = vmatprep.subr.bf16.mxu1 %v491_v0 }
  0x3e   :  { %372 = vmatpush3.bf16.msra.mxu0 %v371_v19  ;;  %396 = vmatpush3.bf16.msra.mxu1 %v371_v19 }
  0x3f   :  { %373 = vmatprep.subr.bf16.mxu0 %v491_v0  ;;  %397 = vmatprep.subr.bf16.mxu1 %v491_v0 }
  0x42   :  { %375 = vmatpush3.bf16.msra.mxu0 %v374_v22  ;;  %399 = vmatpush3.bf16.msra.mxu1 %v374_v22 }
  0x43   :  { %376 = vmatprep.subr.bf16.mxu0 %v491_v0  ;;  %400 = vmatprep.subr.bf16.mxu1 %v491_v0 }
  0x46   :  { %378 = vmatpush3.bf16.msra.mxu0 %v377_v25  ;;  %402 = vmatpush3.bf16.msra.mxu1 %v377_v25 }
  0x49   :  { %318 = vmatmul.mubr.f32.vlgmr.msra.gmra.mrb[0].mxu0 %v44_v26 }
 0x11c   :  { %v127_v27 = vpop.f32.mrb[0].mxu0 }
 0x11d   :  { %v131_v28 = vmul.f32 0.03125, %v127_v27  ;;  %v319_v29 = vpop.f32.mrb[1].mxu0 }
 0x11f   :  { %v132_v30 = vsub.f32 %v44_v26, %v131_v28 }
 0x121   :  { %v133_v31 = vmul.f32 %v132_v30, %v132_v30 }
 0x123   :  { %353 = vmatmul.mubr.f32.vlgmr.msra.gmra.mrb[0].mxu1 %v133_v31 }
 0x1f6   :  { %v200_v32 = vpop.f32.mrb[0].mxu1 }
 0x1f7   :  { %v205_v33 = vmul.f32 0.032258064, %v200_v32  ;;  %v354_v34 = vpop.f32.mrb[1].mxu1 }
 0x1f9   :  { %411 = vrsqrt.f32 %v205_v33  ;;  %vm208_vm1 = vcmp.eq.f32.partialorder %v205_v33, inf  ;;  %v211_v37 = vand.u32 2147483648, %v205_v33  ;;  %vm210_vm2 = vcmp.eq.f32.partialorder %v205_v33, 0.0 }
 0x203   :  { %v412_v35 = vpop.eup %411 }
 0x204   :  { %v207_v36 = vmul.f32 %v412_v35, %v205_v33 }
 0x206   :  { %v209_v38 = vsel %vm208_vm1, %v205_v33, %v207_v36 }
 0x207   :  { %v212_v39 = vsel %vm210_vm2, %v211_v37, %v209_v38 }
 0x208   :  { %v213_v40 = vadd.f32 1e-06, %v212_v39 }
 0x20a   :  { %413 = vrcp.f32 %v213_v40 }
 0x214   :  { %v414_v41 = vpop.eup %413 }
 0x215   :  { %v215_v43 = vmul.f32 %v414_v41, %v132_v30 }
 0x217   :  { %v223_v45 = vmul.f32 %v249_v42, %v215_v43 }
 0x219   :  { %v231_v46 = vadd.f32 %v250_v44, %v223_v45 }
 0x21b   :  { %232 = vst [vmem:[#allocation7] sm:$0xf] %v231_v46 }
 0x21c   :  { %470 = shalt.err (!%p467_p6)
}
 0x21d   :  { %s471_s21 = scalar_lea.hbm %s573_s4, 64 }
 0x21e   :  { %p472_p7 = scmp.ne.s32.totalorder %s573_s4, %s471_s21  ;;  %p475_p8 = scmp.lt.u32.totalorder %s471_s21, %s573_s4 }
 0x220   :  { %p477_p9 = pnand %p475_p8, %p472_p7 }
 0x222   :  { %480 = shalt.err (!%p477_p9)
}
 0x223   :  { %242 = dma.vmem_to_hbm [thread:$0]  %s240_s18, 64, %s573_s4, [#allocation4]  }
 0x224   :  { %485 = dma.done.wait [#allocation4], 64  }
 0x225   :  { %486 = vsyncadd [#allocation4], 4294967232 }
 0x226   :  { %246 = vsyncpa [#allocation3], 1 }
 0x227   :  { %247 = vsyncpa [#allocation6], 1 }
 0x228   :  { %248 = vsyncpa [#allocation4], 1 }

</bundles_post_ra>
